<compile_context>
chip_gen: v7x
topology: tpu7x:2x2x1
jax: 0.10.0
libtpu: 0.0.40
codegen_flags: <defaults>
</compile_context>

<pallas_src>
import jax
import jax.numpy as jnp
from jax.experimental import pallas as pl
from jax.experimental.pallas import tpu as pltpu

LATENT_DIM = 90
LATENT_PAD = 128      # lane-dense K dim for fc1
H1 = 256
H2 = 512
H3 = 100
H3_PAD = 128          # lane-dense output width for fc3


def _round_up(x, m):
    return (x + m - 1) // m * m


def _generator_kernel(z_ref, w1_ref, b1_ref, w2_ref, b2_ref, w3_ref, b3_ref,
                      o_ref):
    """Fused 3-layer MLP (bf16 matmul inputs, f32 accumulate/bias/ReLU)."""
    x = z_ref[...]                                                   # (TB,128) bf16
    h = jnp.dot(x, w1_ref[...], preferred_element_type=jnp.float32)  # (TB,256) f32
    h = jnp.maximum(h + b1_ref[...], 0.0)
    h = jnp.dot(h.astype(jnp.bfloat16), w2_ref[...],
                preferred_element_type=jnp.float32)                  # (TB,512) f32
    h = jnp.maximum(h + b2_ref[...], 0.0)
    h = jnp.dot(h.astype(jnp.bfloat16), w3_ref[...],
                preferred_element_type=jnp.float32)                  # (TB,128) f32
    h = jnp.maximum(h + b3_ref[...], 0.0)
    o_ref[...] = h.astype(o_ref.dtype)


def generator_forward(z, params, *, batch_tile=256):
    """Generator forward with a single fused Pallas kernel.

    z: (B, LATENT_DIM) float32.  Returns (B, 100) float32.
    Weights (<1 MiB as bf16) stay VMEM-resident; the grid iterates over batch
    tiles only.
    """
    w1, b1, w2, b2, w3, b3 = params
    B = z.shape[0]
    assert batch_tile % 8 == 0, "batch_tile must be a multiple of 8"

    # Effective tile (multiple of 8) and padded batch so Bp % tb == 0.
    tb = min(batch_tile, _round_up(B, 8))
    Bp = _round_up(B, tb)
    grid = (Bp // tb,)

    # Zero-pad / cast inputs for bf16 MXU inputs and lane-dense layouts.
    bf16 = jnp.bfloat16
    z_p = jnp.zeros((Bp, LATENT_PAD), bf16).at[:B, :LATENT_DIM].set(
        z.astype(bf16))
    w1_p = jnp.zeros((LATENT_PAD, H1), bf16).at[:LATENT_DIM, :].set(
        w1.astype(bf16))
    w2_b = w2.astype(bf16)
    w3_p = jnp.zeros((H2, H3_PAD), bf16).at[:, :H3].set(w3.astype(bf16))
    b3_p = jnp.zeros((1, H3_PAD), jnp.float32).at[:, :H3].set(b3)

    in_specs = [
        pl.BlockSpec((tb, LATENT_PAD), lambda i: (i, 0)),   # z (batch-tiled)
        pl.BlockSpec((LATENT_PAD, H1), lambda i: (0, 0)),   # w1 (invariant)
        pl.BlockSpec((1, H1), lambda i: (0, 0)),            # b1
        pl.BlockSpec((H1, H2), lambda i: (0, 0)),           # w2
        pl.BlockSpec((1, H2), lambda i: (0, 0)),            # b2
        pl.BlockSpec((H2, H3_PAD), lambda i: (0, 0)),       # w3
        pl.BlockSpec((1, H3_PAD), lambda i: (0, 0)),        # b3
    ]
    out_specs = pl.BlockSpec((tb, H3_PAD), lambda i: (i, 0))

    weight_bytes = (w1_p.size + w2_b.size + w3_p.size) * 2 \
                   + (b1.size + b2.size + b3_p.size) * 4
    cost = pl.CostEstimate(
        flops=2 * Bp * (LATENT_PAD * H1 + H1 * H2 + H2 * H3_PAD),
        transcendentals=0,
        bytes_accessed=Bp * LATENT_PAD * 2 + Bp * H3_PAD * 4 + weight_bytes,
    )

    out = pl.pallas_call(
        _generator_kernel,
        out_shape=jax.ShapeDtypeStruct((Bp, H3_PAD), jnp.float32),
        grid=grid,
        in_specs=in_specs,
        out_specs=out_specs,
        compiler_params=pltpu.CompilerParams(
            dimension_semantics=("parallel",)),
        cost_estimate=cost,
    )(z_p, w1_p, b1, w2_b, b2, w3_p, b3_p)

    return out[:B, :H3]


def init_generator_params(key):
    """Deterministic init matching torch.nn.Linear default
    (uniform(-1/sqrt(fan_in), 1/sqrt(fan_in))). Weights stored as (in, out)."""
    def linear(k, fan_in, fan_out):
        kw, kb = jax.random.split(k)
        bound = 1.0 / jnp.sqrt(jnp.float32(fan_in))
        w = jax.random.uniform(kw, (fan_in, fan_out), jnp.float32,
                               minval=-bound, maxval=bound)
        b = jax.random.uniform(kb, (1, fan_out), jnp.float32,
                               minval=-bound, maxval=bound)
        return w, b

    k1, k2, k3 = jax.random.split(key, 3)
    w1, b1 = linear(k1, LATENT_DIM, H1)
    w2, b2 = linear(k2, H1, H2)
    w3, b3 = linear(k3, H2, H3)
    return (w1, b1, w2, b2, w3, b3)


def generator_reference(z, params, *, bf16_inputs=True):
    """Pure-JAX reference with matching numerics (bf16 matmul inputs, f32 acc)."""
    w1, b1, w2, b2, w3, b3 = params
    cast = (lambda a: a.astype(jnp.bfloat16)) if bf16_inputs else (lambda a: a)
    x = jnp.maximum(
        jnp.dot(cast(z), cast(w1), preferred_element_type=jnp.float32) + b1, 0.0)
    x = jnp.maximum(
        jnp.dot(cast(x), cast(w2), preferred_element_type=jnp.float32) + b2, 0.0)
    x = jnp.maximum(
        jnp.dot(cast(x), cast(w3), preferred_element_type=jnp.float32) + b3, 0.0)
    return x


if __name__ == "__main__":
    key = jax.random.PRNGKey(0)
    k_params, k_z = jax.random.split(key)

    params = init_generator_params(k_params)

    B = 32  # matches the module's documented batch size
    z = jax.random.normal(k_z, (B, LATENT_DIM), jnp.float32)

    out = generator_forward(z, params)
    out = jax.block_until_ready(out)

    ref_bf16 = generator_reference(z, params, bf16_inputs=True)
    ref_f32 = generator_reference(z, params, bf16_inputs=False)

    assert out.shape == (B, H3)
    # Tight check against the numerics-matched reference.
    assert jnp.allclose(out, ref_bf16, atol=1e-3, rtol=1e-3)
    # Loose sanity check against the full-f32 reference (bf16 rounding only).
    assert jnp.allclose(out, ref_f32, atol=5e-2, rtol=5e-2)

    print("KERNEL_OK")
</pallas_src>

<mosaic_0001>
module attributes {stable_mosaic.version = 11 : i64} {
  func.func @_generator_kernel(%arg0: i32, %arg1: memref<32x128xbf16, #tpu.memory_space<vmem>>, %arg2: memref<128x256xbf16, #tpu.memory_space<vmem>>, %arg3: memref<1x256xf32, #tpu.memory_space<vmem>>, %arg4: memref<256x512xbf16, #tpu.memory_space<vmem>>, %arg5: memref<1x512xf32, #tpu.memory_space<vmem>>, %arg6: memref<512x128xbf16, #tpu.memory_space<vmem>>, %arg7: memref<1x128xf32, #tpu.memory_space<vmem>>, %arg8: memref<32x128xf32, #tpu.memory_space<vmem>>) attributes {dimension_semantics = [#tpu.dimension_semantics<parallel>], iteration_bounds = array<i64: 1>, scalar_prefetch = 0 : i64, scratch_operands = 0 : i64, tpu.core_type = #tpu.core_type<tc>, window_params = [{transform_indices = @transform_0, window_bounds = array<i64: 32, 128>}, {pipeline_mode = #tpu.pipeline_mode<synchronous>, transform_indices = @transform_1, window_bounds = array<i64: 128, 256>}, {pipeline_mode = #tpu.pipeline_mode<synchronous>, transform_indices = @transform_2, window_bounds = array<i64: 1, 256>}, {pipeline_mode = #tpu.pipeline_mode<synchronous>, transform_indices = @transform_3, window_bounds = array<i64: 256, 512>}, {pipeline_mode = #tpu.pipeline_mode<synchronous>, transform_indices = @transform_4, window_bounds = array<i64: 1, 512>}, {pipeline_mode = #tpu.pipeline_mode<synchronous>, transform_indices = @transform_5, window_bounds = array<i64: 512, 128>}, {pipeline_mode = #tpu.pipeline_mode<synchronous>, transform_indices = @transform_6, window_bounds = array<i64: 1, 128>}, {transform_indices = @transform_7, window_bounds = array<i64: 32, 128>}]} {
    %c0 = arith.constant 0 : index
    %c0_0 = arith.constant 0 : index
    %0 = vector.load %arg1[%c0, %c0_0] : memref<32x128xbf16, #tpu.memory_space<vmem>>, vector<32x128xbf16>
    %c0_1 = arith.constant 0 : index
    %c0_2 = arith.constant 0 : index
    %1 = vector.load %arg2[%c0_1, %c0_2] : memref<128x256xbf16, #tpu.memory_space<vmem>>, vector<128x256xbf16>
    %cst = arith.constant dense<0.000000e+00> : vector<32x256xf32>
    %2 = tpu.matmul %0, %1, %cst {dimension_numbers = #tpu.dot_dimension_numbers<[1], [0], [0], [1], [0, 0, 1, 1], [], []>} : vector<32x128xbf16>, vector<128x256xbf16>, vector<32x256xf32> -> vector<32x256xf32>
    %c0_3 = arith.constant 0 : index
    %c0_4 = arith.constant 0 : index
    %3 = vector.load %arg3[%c0_3, %c0_4] : memref<1x256xf32, #tpu.memory_space<vmem>>, vector<1x256xf32>
    %4 = vector.broadcast %3 : vector<1x256xf32> to vector<32x256xf32>
    %5 = arith.addf %2, %4 : vector<32x256xf32>
    %cst_5 = arith.constant 0.000000e+00 : f32
    %6 = vector.broadcast %cst_5 : f32 to vector<32x256xf32>
    %7 = arith.maximumf %5, %6 : vector<32x256xf32>
    %8 = arith.truncf %7 : vector<32x256xf32> to vector<32x256xbf16>
    %c0_6 = arith.constant 0 : index
    %c0_7 = arith.constant 0 : index
    %9 = vector.load %arg4[%c0_6, %c0_7] : memref<256x512xbf16, #tpu.memory_space<vmem>>, vector<256x512xbf16>
    %cst_8 = arith.constant dense<0.000000e+00> : vector<32x512xf32>
    %10 = tpu.matmul %8, %9, %cst_8 {dimension_numbers = #tpu.dot_dimension_numbers<[1], [0], [0], [1], [0, 0, 1, 1], [], []>} : vector<32x256xbf16>, vector<256x512xbf16>, vector<32x512xf32> -> vector<32x512xf32>
    %c0_9 = arith.constant 0 : index
    %c0_10 = arith.constant 0 : index
    %11 = vector.load %arg5[%c0_9, %c0_10] : memref<1x512xf32, #tpu.memory_space<vmem>>, vector<1x512xf32>
    %12 = vector.broadcast %11 : vector<1x512xf32> to vector<32x512xf32>
    %13 = arith.addf %10, %12 : vector<32x512xf32>
    %cst_11 = arith.constant 0.000000e+00 : f32
    %14 = vector.broadcast %cst_11 : f32 to vector<32x512xf32>
    %15 = arith.maximumf %13, %14 : vector<32x512xf32>
    %16 = arith.truncf %15 : vector<32x512xf32> to vector<32x512xbf16>
    %c0_12 = arith.constant 0 : index
    %c0_13 = arith.constant 0 : index
    %17 = vector.load %arg6[%c0_12, %c0_13] : memref<512x128xbf16, #tpu.memory_space<vmem>>, vector<512x128xbf16>
    %cst_14 = arith.constant dense<0.000000e+00> : vector<32x128xf32>
    %18 = tpu.matmul %16, %17, %cst_14 {dimension_numbers = #tpu.dot_dimension_numbers<[1], [0], [0], [1], [0, 0, 1, 1], [], []>} : vector<32x512xbf16>, vector<512x128xbf16>, vector<32x128xf32> -> vector<32x128xf32>
    %c0_15 = arith.constant 0 : index
    %c0_16 = arith.constant 0 : index
    %19 = vector.load %arg7[%c0_15, %c0_16] : memref<1x128xf32, #tpu.memory_space<vmem>>, vector<1x128xf32>
    %20 = vector.broadcast %19 : vector<1x128xf32> to vector<32x128xf32>
    %21 = arith.addf %18, %20 : vector<32x128xf32>
    %cst_17 = arith.constant 0.000000e+00 : f32
    %22 = vector.broadcast %cst_17 : f32 to vector<32x128xf32>
    %23 = arith.maximumf %21, %22 : vector<32x128xf32>
    %c0_18 = arith.constant 0 : index
    %c0_19 = arith.constant 0 : index
    %24 = vector.load %arg8[%c0_18, %c0_19] : memref<32x128xf32, #tpu.memory_space<vmem>>, vector<32x128xf32>
    tpu.vector_store %arg8[%c0_18, %c0_19], %23 {strides = array<i32>} : memref<32x128xf32, #tpu.memory_space<vmem>>, vector<32x128xf32>,
    return
  }
  func.func @transform_0(%arg0: i32) -> (i32, i32) {
    %c0_i32 = arith.constant 0 : i32
    %c0_i32_0 = arith.constant 0 : i32
    return %arg0, %c0_i32 : i32, i32
  }
  func.func @transform_1(%arg0: i32) -> (i32, i32) {
    %c0_i32 = arith.constant 0 : i32
    %c0_i32_0 = arith.constant 0 : i32
    %c0_i32_1 = arith.constant 0 : i32
    return %c0_i32, %c0_i32_0 : i32, i32
  }
  func.func @transform_2(%arg0: i32) -> (i32, i32) {
    %c0_i32 = arith.constant 0 : i32
    %c0_i32_0 = arith.constant 0 : i32
    %c0_i32_1 = arith.constant 0 : i32
    return %c0_i32, %c0_i32_0 : i32, i32
  }
  func.func @transform_3(%arg0: i32) -> (i32, i32) {
    %c0_i32 = arith.constant 0 : i32
    %c0_i32_0 = arith.constant 0 : i32
    %c0_i32_1 = arith.constant 0 : i32
    return %c0_i32, %c0_i32_0 : i32, i32
  }
  func.func @transform_4(%arg0: i32) -> (i32, i32) {
    %c0_i32 = arith.constant 0 : i32
    %c0_i32_0 = arith.constant 0 : i32
    %c0_i32_1 = arith.constant 0 : i32
    return %c0_i32, %c0_i32_0 : i32, i32
  }
  func.func @transform_5(%arg0: i32) -> (i32, i32) {
    %c0_i32 = arith.constant 0 : i32
    %c0_i32_0 = arith.constant 0 : i32
    %c0_i32_1 = arith.constant 0 : i32
    return %c0_i32, %c0_i32_0 : i32, i32
  }
  func.func @transform_6(%arg0: i32) -> (i32, i32) {
    %c0_i32 = arith.constant 0 : i32
    %c0_i32_0 = arith.constant 0 : i32
    %c0_i32_1 = arith.constant 0 : i32
    return %c0_i32, %c0_i32_0 : i32, i32
  }
  func.func @transform_7(%arg0: i32) -> (i32, i32) {
    %c0_i32 = arith.constant 0 : i32
    %c0_i32_0 = arith.constant 0 : i32
    return %arg0, %c0_i32 : i32, i32
  }
}

</mosaic_0001>

<bundles_post_ra>
// kernel: tpu_custom_call.1
= control target key start
LH: loop header
LB: loop body
LE: loop exit
PB: predicated region body
PF: predicated region fallthrough
CT: control target
= control target key end

     0   :  { %12 = vsyncpa [#allocation3], 0  ;;  %s1880_s0 = inlined_call_operand.hbm [shape: bf16[32,128], index: 0, kind: input, shape index: {}]   ;;  %s1881_s1 = inlined_call_operand.hbm [shape: bf16[128,256], index: 1, kind: input, shape index: {}]   ;;  %s1882_s2 = inlined_call_operand.vmem [shape: f32[1,256], index: 2, kind: input, shape index: {}]   ;;  %s1883_s3 = inlined_call_operand.hbm [shape: bf16[256,512], index: 3, kind: input, shape index: {}]   ;;  %s1884_s4 = inlined_call_operand.vmem [shape: f32[1,512], index: 4, kind: input, shape index: {}]   ;;  %s1885_s5 = inlined_call_operand.hbm [shape: bf16[512,128], index: 5, kind: input, shape index: {}]   ;;  %s1886_s6 = inlined_call_operand.vmem [shape: f32[1,128], index: 6, kind: input, shape index: {}]   ;;  %s1887_s7 = inlined_call_operand.hbm [shape: f32[32,128], index: 7, kind: output, shape index: {}]  }
   0x1   :  { %13 = vsyncpa [#allocation6], 0 }
   0x2   :  { %14 = vsyncpa [#allocation9], 0 }
   0x3   :  { %15 = vsyncpa [#allocation4], 0  ;;  %s1667_s24 = smov [#allocation5]   ;;  %s1549_s28 = scalar_lea.hbm %s1881_s1, 2048 }
   0x4   :  { %s33_s25 = sshll.u32 %s1667_s24, 4  ;;  %p1550_p0 = scmp.ne.s32.totalorder %s1881_s1, %s1549_s28  ;;  %s34_s25 = int_to_ptr.vmem [resolvable:$true] %s33_s25 }
   0x5   :  { %p1553_p1 = scmp.lt.u32.totalorder %s1549_s28, %s1881_s1 }
   0x7   :  { %p1555_p2 = pnand %p1553_p1, %p1550_p0 }
   0x9   :  { %1558 = shalt.err (!%p1555_p2)
}
   0xa   :  { %s1559_s10 = scalar_lea.vmem %s34_s25, 2048  ;;  %p1564_p4 = scmp.lt.s32.totalorder %s34_s25, %s34_s25 }
   0xb   :  { %p1560_p3 = scmp.ne.s32.totalorder %s34_s25, %s1559_s10  ;;  %p1565_p5 = scmp.lt.s32.totalorder %s1559_s10, %s1559_s10 }
   0xd   :  { %p1566_p6 = por %p1565_p5, %p1564_p4 }
   0xf   :  { %p1567_p7 = pnand %p1566_p6, %p1560_p3 }
  0x11   :  { %1570 = shalt.err (!%p1567_p7)
}
  0x12   :  { %s1668_s11 = smov 128   ;;  %s1669_s12 = smov 8  }
  0x13   :  { %39 = dma.hbm_to_vmem [thread:$0]  %s1881_s1, 2048, %s34_s25, [#allocation6], %s1668_s11, %s1668_s11, %s1669_s12  }
  0x14   :  { %s1670_s15 = smov [#allocation2]   ;;  %s1571_s19 = scalar_lea.hbm %s1880_s0, 256 }
  0x15   :  { %s21_s16 = sshll.u32 %s1670_s15, 4  ;;  %p1572_p8 = scmp.ne.s32.totalorder %s1880_s0, %s1571_s19  ;;  %s22_s16 = int_to_ptr.vmem [resolvable:$true] %s21_s16 }
  0x16   :  { %p1575_p9 = scmp.lt.u32.totalorder %s1571_s19, %s1880_s0 }
  0x18   :  { %p1577_p10 = pnand %p1575_p9, %p1572_p8 }
  0x1a   :  { %1580 = shalt.err (!%p1577_p10)
}
  0x1b   :  { %s1581_s24 = scalar_lea.vmem %s22_s16, 256  ;;  %p1586_p12 = scmp.lt.s32.totalorder %s22_s16, %s22_s16 }
  0x1c   :  { %p1582_p11 = scmp.ne.s32.totalorder %s22_s16, %s1581_s24  ;;  %p1587_p13 = scmp.lt.s32.totalorder %s1581_s24, %s1581_s24 }
  0x1e   :  { %p1588_p0 = por %p1587_p13, %p1586_p12 }
  0x20   :  { %p1589_p1 = pnand %p1588_p0, %p1582_p11 }
  0x22   :  { %1592 = shalt.err (!%p1589_p1)
}
  0x23   :  { %s1671_s1 = smov 64   ;;  %s1672_s25 = smov 4  }
  0x24   :  { %27 = dma.hbm_to_vmem [thread:$0]  %s1880_s0, 256, %s22_s16, [#allocation3], %s1671_s1, %s1671_s1, %s1672_s25  }
  0x25   :  { %s1673_s28 = smov [#allocation7]   ;;  %s1593_s9 = scalar_lea.hbm %s1883_s3, 8192 }
  0x26   :  { %s47_s29 = sshll.u32 %s1673_s28, 4  ;;  %p1594_p2 = scmp.ne.s32.totalorder %s1883_s3, %s1593_s9  ;;  %s48_s29 = int_to_ptr.vmem [resolvable:$true] %s47_s29 }
  0x27   :  { %p1597_p3 = scmp.lt.u32.totalorder %s1593_s9, %s1883_s3 }
  0x29   :  { %p1599_p4 = pnand %p1597_p3, %p1594_p2 }
  0x2b   :  { %1602 = shalt.err (!%p1599_p4)
}
  0x2c   :  { %s1603_s17 = scalar_lea.vmem %s48_s29, 8192  ;;  %p1608_p6 = scmp.lt.s32.totalorder %s48_s29, %s48_s29 }
  0x2d   :  { %p1604_p5 = scmp.ne.s32.totalorder %s48_s29, %s1603_s17  ;;  %p1609_p7 = scmp.lt.s32.totalorder %s1603_s17, %s1603_s17 }
  0x2f   :  { %p1610_p8 = por %p1609_p7, %p1608_p6 }
  0x31   :  { %p1611_p9 = pnand %p1610_p8, %p1604_p5 }
  0x33   :  { %1614 = shalt.err (!%p1611_p9)
}
  0x34   :  { %s1674_s0 = smov 256   ;;  %s1675_s16 = smov 16  }
  0x35   :  { %53 = dma.hbm_to_vmem [thread:$0]  %s1883_s3, 8192, %s48_s29, [#allocation6], %s1674_s0, %s1674_s0, %s1675_s16  }
  0x36   :  { %s1676_s20 = smov [#allocation8]   ;;  %s1615_s24 = scalar_lea.hbm %s1885_s5, 4096 }
  0x37   :  { %s61_s21 = sshll.u32 %s1676_s20, 4  ;;  %p1616_p10 = scmp.ne.s32.totalorder %s1885_s5, %s1615_s24  ;;  %s62_s21 = int_to_ptr.vmem [resolvable:$true] %s61_s21 }
  0x38   :  { %p1619_p11 = scmp.lt.u32.totalorder %s1615_s24, %s1885_s5 }
  0x3a   :  { %p1621_p12 = pnand %p1619_p11, %p1616_p10 }
  0x3c   :  { %1624 = shalt.err (!%p1621_p12)
}
  0x3d   :  { %s1625_s8 = scalar_lea.vmem %s62_s21, 4096  ;;  %p1630_p0 = scmp.lt.s32.totalorder %s62_s21, %s62_s21 }
  0x3e   :  { %p1626_p13 = scmp.ne.s32.totalorder %s62_s21, %s1625_s8  ;;  %p1631_p1 = scmp.lt.s32.totalorder %s1625_s8, %s1625_s8 }
  0x40   :  { %p1632_p2 = por %p1631_p1, %p1630_p0 }
  0x42   :  { %p1633_p3 = pnand %p1632_p2, %p1626_p13 }
  0x44   :  { %1636 = shalt.err (!%p1633_p3)
}
  0x45   :  { %67 = dma.hbm_to_vmem [thread:$0]  %s1885_s5, 4096, %s62_s21, [#allocation9], %s1671_s1, %s1671_s1, %s1672_s25  }
  0x46   :  { %1659 = dma.done.wait [#allocation3], 256  }
  0x47   :  { %1660 = vsyncadd [#allocation3], 4294967040 }
  0x48   :  { %1661 = dma.done.wait [#allocation6], 10240  }
  0x49   :  { %1662 = vsyncadd [#allocation6], 4294957056 }
  0x4a   :  { %1663 = dma.done.wait [#allocation9], 4096  }
  0x4b   :  { %1664 = vsyncadd [#allocation9], 4294963200  ;;  %v1677_v0 = vmov 0   ;;  %v1395_v1 = vld [vmem:[#allocation5 + $0x4] ss:$8 sps:$4 sm:$0xff]   ;;  %v1419_v28 = vld [vmem:[#allocation2] sm:$0xff]  }
  0x4c   :  { %239 = vmatprep.mubr.bf16.mxu0 %v1677_v0  ;;  %v1397_v2 = vld [vmem:[#allocation5] ss:$8 sps:$4 sm:$0xff]   ;;  %207 = vmatprep.subr.bf16.mxu0 %v1395_v1  ;;  %v1398_v3 = vld [vmem:[#allocation5 + $0x14] ss:$8 sps:$4 sm:$0xff]   ;;  %v1400_v4 = vld [vmem:[#allocation5 + $0x10] ss:$8 sps:$4 sm:$0xff]  }
  0x4d   :  { %208 = vmatpush1.bf16.msra.mxu0 %v1397_v2  ;;  %v1401_v5 = vld [vmem:[#allocation5 + $0x24] ss:$8 sps:$4 sm:$0xff]   ;;  %v1403_v6 = vld [vmem:[#allocation5 + $0x20] ss:$8 sps:$4 sm:$0xff]   ;;  %v1404_v7 = vld [vmem:[#allocation5 + $0x34] ss:$8 sps:$4 sm:$0xff]  }
  0x4e   :  { %209 = vmatprep.subr.bf16.mxu0 %v1398_v3  ;;  %v1406_v8 = vld [vmem:[#allocation5 + $0x30] ss:$8 sps:$4 sm:$0xff]   ;;  %v1407_v9 = vld [vmem:[#allocation5 + $0x44] ss:$8 sps:$4 sm:$0xff]   ;;  %v1409_v11 = vld [vmem:[#allocation5 + $0x40] ss:$8 sps:$4 sm:$0xff]  }
  0x4f   :  { %v1421_v10 = vld [vmem:[#allocation7 + $0x4] ss:$16 sps:$4 sm:$0xff]   ;;  %v1426_v13 = vld [vmem:[#allocation7] ss:$16 sps:$4 sm:$0xff]   ;;  %v1425_v26 = vld [vmem:[#allocation7 + $0xc] ss:$16 sps:$4 sm:$0xff]  }
  0x50   :  { %v1410_v12 = vld [vmem:[#allocation5 + $0x54] ss:$8 sps:$4 sm:$0xff]   ;;  %678 = vmatprep.subr.bf16.mxu1 %v1421_v10  ;;  %v1432_v15 = vld [vmem:[#allocation7 + $0x20] ss:$16 sps:$4 sm:$0xff]   ;;  %v1413_v18 = vld [vmem:[#allocation5 + $0x64] ss:$8 sps:$4 sm:$0xff]  }
  0x51   :  { %210 = vmatpush1.bf16.msra.mxu0 %v1400_v4  ;;  %v1427_v14 = vld [vmem:[#allocation7 + $0x24] ss:$16 sps:$4 sm:$0xff]   ;;  %679 = vmatpush1.bf16.msra.mxu1 %v1426_v13  ;;  %v1412_v17 = vld [vmem:[#allocation5 + $0x50] ss:$8 sps:$4 sm:$0xff]   ;;  %v1415_v21 = vld [vmem:[#allocation5 + $0x60] ss:$8 sps:$4 sm:$0xff]  }
  0x52   :  { %211 = vmatprep.subr.bf16.mxu0 %v1401_v5  ;;  %680 = vmatprep.subr.bf16.mxu1 %v1427_v14  ;;  %v1433_v16 = vld [vmem:[#allocation7 + $0x44] ss:$16 sps:$4 sm:$0xff]   ;;  %v1438_v19 = vld [vmem:[#allocation7 + $0x40] ss:$16 sps:$4 sm:$0xff]   ;;  %v1423_v30 = vld [vmem:[#allocation7 + $0x8] ss:$16 sps:$4 sm:$0xff]  }
  0x53   :  { %v1439_v20 = vld [vmem:[#allocation7 + $0x64] ss:$16 sps:$4 sm:$0xff]   ;;  %v1444_v23 = vld [vmem:[#allocation7 + $0x60] ss:$16 sps:$4 sm:$0xff]   ;;  %v1431_v31 = vld [vmem:[#allocation7 + $0x2c] ss:$16 sps:$4 sm:$0xff]  }
  0x54   :  { %v1416_v22 = vld [vmem:[#allocation5 + $0x74] ss:$8 sps:$4 sm:$0xff]   ;;  %v1418_v25 = vld [vmem:[#allocation5 + $0x70] ss:$8 sps:$4 sm:$0xff]  }
  0x55   :  { %212 = vmatpush1.bf16.msra.mxu0 %v1403_v6  ;;  %681 = vmatpush1.bf16.msra.mxu1 %v1432_v15  ;;  %v1445_v24 = vld [vmem:[#allocation7 + $0x84] ss:$16 sps:$4 sm:$0xff]   ;;  %v1450_v27 = vld [vmem:[#allocation7 + $0x80] ss:$16 sps:$4 sm:$0xff]   ;;  %v1429_v34 = vld [vmem:[#allocation7 + $0x28] ss:$16 sps:$4 sm:$0xff]  }
  0x56   :  { %213 = vmatprep.subr.bf16.mxu0 %v1404_v7  ;;  %682 = vmatprep.subr.bf16.mxu1 %v1433_v16  ;;  %v1451_v29 = vld [vmem:[#allocation7 + $0xa4] ss:$16 sps:$4 sm:$0xff]   ;;  %v1456_v32 = vld [vmem:[#allocation7 + $0xa0] ss:$16 sps:$4 sm:$0xff]   ;;  %v1437_v35 = vld [vmem:[#allocation7 + $0x4c] ss:$16 sps:$4 sm:$0xff]  }
  0x57   :  { %v1457_v33 = vld [vmem:[#allocation7 + $0xc4] ss:$16 sps:$4 sm:$0xff]   ;;  %v1462_v36 = vld [vmem:[#allocation7 + $0xc0] ss:$16 sps:$4 sm:$0xff]   ;;  %v1420_v37 = vld [vmem:[#allocation2 + $0x8] sm:$0xff]  }
  0x58   :  { %v1463_v38 = vld [vmem:[#allocation7 + $0xe4] ss:$16 sps:$4 sm:$0xff]   ;;  %v1435_v39 = vld [vmem:[#allocation7 + $0x48] ss:$16 sps:$4 sm:$0xff]   ;;  %v1443_v40 = vld [vmem:[#allocation7 + $0x6c] ss:$16 sps:$4 sm:$0xff]  }
  0x59   :  { %214 = vmatpush1.bf16.msra.mxu0 %v1406_v8  ;;  %683 = vmatpush1.bf16.msra.mxu1 %v1438_v19  ;;  %v1468_v41 = vld [vmem:[#allocation7 + $0xe0] ss:$16 sps:$4 sm:$0xff]   ;;  %v1469_v42 = vld [vmem:[#allocation7 + $0x104] ss:$16 sps:$4 sm:$0xff]   ;;  %v1441_v43 = vld [vmem:[#allocation7 + $0x68] ss:$16 sps:$4 sm:$0xff]  }
  0x5a   :  { %215 = vmatprep.subr.bf16.mxu0 %v1407_v9  ;;  %684 = vmatprep.subr.bf16.mxu1 %v1439_v20  ;;  %v1449_v44 = vld [vmem:[#allocation7 + $0x8c] ss:$16 sps:$4 sm:$0xff]   ;;  %v1474_v45 = vld [vmem:[#allocation7 + $0x100] ss:$16 sps:$4 sm:$0xff]   ;;  %v1475_v46 = vld [vmem:[#allocation7 + $0x124] ss:$16 sps:$4 sm:$0xff]  }
  0x5b   :  { %v1447_v47 = vld [vmem:[#allocation7 + $0x88] ss:$16 sps:$4 sm:$0xff]   ;;  %v1455_v48 = vld [vmem:[#allocation7 + $0xac] ss:$16 sps:$4 sm:$0xff]   ;;  %v1480_v50 = vld [vmem:[#allocation7 + $0x120] ss:$16 sps:$4 sm:$0xff]  }
  0x5c   :  { %v1453_v49 = vld [vmem:[#allocation7 + $0xa8] ss:$16 sps:$4 sm:$0xff]   ;;  %v1481_v51 = vld [vmem:[#allocation7 + $0x144] ss:$16 sps:$4 sm:$0xff]   ;;  %v1461_v52 = vld [vmem:[#allocation7 + $0xcc] ss:$16 sps:$4 sm:$0xff]  }
  0x5d   :  { %216 = vmatpush1.bf16.msra.mxu0 %v1409_v11  ;;  %685 = vmatpush1.bf16.msra.mxu1 %v1444_v23  ;;  %v1486_v53 = vld [vmem:[#allocation7 + $0x140] ss:$16 sps:$4 sm:$0xff]   ;;  %v1487_v54 = vld [vmem:[#allocation7 + $0x164] ss:$16 sps:$4 sm:$0xff]   ;;  %v1459_v55 = vld [vmem:[#allocation7 + $0xc8] ss:$16 sps:$4 sm:$0xff]  }
  0x5e   :  { %217 = vmatprep.subr.bf16.mxu0 %v1410_v12  ;;  %686 = vmatprep.subr.bf16.mxu1 %v1445_v24  ;;  %v1467_v56 = vld [vmem:[#allocation7 + $0xec] ss:$16 sps:$4 sm:$0xff]   ;;  %v1492_v57 = vld [vmem:[#allocation7 + $0x160] ss:$16 sps:$4 sm:$0xff]   ;;  %v1493_v58 = vld [vmem:[#allocation7 + $0x184] ss:$16 sps:$4 sm:$0xff]  }
  0x5f   :  { %v1465_v59 = vld [vmem:[#allocation7 + $0xe8] ss:$16 sps:$4 sm:$0xff]   ;;  %v1473_v60 = vld [vmem:[#allocation7 + $0x10c] ss:$16 sps:$4 sm:$0xff]   ;;  %v1498_v61 = vld [vmem:[#allocation7 + $0x180] ss:$16 sps:$4 sm:$0xff]  }
  0x60   :  { %v1499_v62 = vld [vmem:[#allocation7 + $0x1a4] ss:$16 sps:$4 sm:$0xff]   ;;  %v1471_v63 = vld [vmem:[#allocation7 + $0x108] ss:$16 sps:$4 sm:$0xff]   ;;  %v1485_v2 = vld [vmem:[#allocation7 + $0x14c] ss:$16 sps:$4 sm:$0xff]  }
  0x61   :  { %218 = vmatpush1.bf16.msra.mxu0 %v1412_v17  ;;  %687 = vmatpush1.bf16.msra.mxu1 %v1450_v27  ;;  %v1477_v1 = vld [vmem:[#allocation7 + $0x128] ss:$16 sps:$4 sm:$0xff]   ;;  %v1491_v4 = vld [vmem:[#allocation7 + $0x16c] ss:$16 sps:$4 sm:$0xff]   ;;  %v1504_v10 = vld [vmem:[#allocation7 + $0x1a0] ss:$16 sps:$4 sm:$0xff]  }
  0x62   :  { %219 = vmatprep.subr.bf16.mxu0 %v1413_v18  ;;  %688 = vmatprep.subr.bf16.mxu1 %v1451_v29  ;;  %v1483_v3 = vld [vmem:[#allocation7 + $0x148] ss:$16 sps:$4 sm:$0xff]   ;;  %v1497_v6 = vld [vmem:[#allocation7 + $0x18c] ss:$16 sps:$4 sm:$0xff]   ;;  %v1505_v11 = vld [vmem:[#allocation7 + $0x1c4] ss:$16 sps:$4 sm:$0xff]  }
  0x63   :  { %v1489_v5 = vld [vmem:[#allocation7 + $0x168] ss:$16 sps:$4 sm:$0xff]   ;;  %v1503_v8 = vld [vmem:[#allocation7 + $0x1ac] ss:$16 sps:$4 sm:$0xff]   ;;  %v1510_v14 = vld [vmem:[#allocation7 + $0x1c0] ss:$16 sps:$4 sm:$0xff]  }
  0x64   :  { %v1495_v7 = vld [vmem:[#allocation7 + $0x188] ss:$16 sps:$4 sm:$0xff]   ;;  %v1509_v12 = vld [vmem:[#allocation7 + $0x1cc] ss:$16 sps:$4 sm:$0xff]   ;;  %v1511_v15 = vld [vmem:[#allocation7 + $0x1e4] ss:$16 sps:$4 sm:$0xff]  }
  0x65   :  { %220 = vmatpush1.bf16.msra.mxu0 %v1415_v21  ;;  %689 = vmatpush1.bf16.msra.mxu1 %v1456_v32  ;;  %v1501_v9 = vld [vmem:[#allocation7 + $0x1a8] ss:$16 sps:$4 sm:$0xff]   ;;  %v1515_v16 = vld [vmem:[#allocation7 + $0x1ec] ss:$16 sps:$4 sm:$0xff]   ;;  %v1516_v18 = vld [vmem:[#allocation7 + $0x1e0] ss:$16 sps:$4 sm:$0xff]   ;;  %v105_v21 = vlaneseq }
  0x66   :  { %221 = vmatprep.subr.bf16.mxu0 %v1416_v22  ;;  %690 = vmatprep.subr.bf16.mxu1 %v1457_v33  ;;  %v1507_v13 = vld [vmem:[#allocation7 + $0x1c8] ss:$16 sps:$4 sm:$0xff]   ;;  %v1517_v19 = vld [vmem:[#allocation8 + $0x40] sm:$0xff]   ;;  %v103_v24 = vld [vmem:[%s1882_s2] sm:$0x3] }
  0x67   :  { %v1513_v17 = vld [vmem:[#allocation7 + $0x1e8] ss:$16 sps:$4 sm:$0xff]   ;;  %v1778_v20 = vld [vmem:[#allocation8 + $0xc0] sm:$0xff]   ;;  %v1781_v22 = vshrl.u32 %v105_v21, 7 }
  0x68   :  { %v1831_v21 = vld [vmem:[#allocation8 + $0xf8] sm:$0xff]  }
  0x69   :  { %222 = vmatpush1.bf16.msra.mxu0 %v1418_v25  ;;  %691 = vmatpush1.bf16.msra.mxu1 %v1462_v36  ;;  %v107_v23 = vsub.s32 0, %v1781_v22  ;;  %v111_v25 = vsub.s32 1, %v1781_v22 }
  0x6a   :  { %731 = vmatprep.subr.bf16.mxu0 %v1425_v26  ;;  %692 = vmatprep.subr.bf16.mxu1 %v1463_v38 }
  0x6b   :  { %v108_v26 = vrot.slane %v103_v24, %v107_v23  ;;  %v112_v27 = vrot.slane %v103_v24, %v111_v25  ;;  %v1833_v24 = vld [vmem:[#allocation8 + $0xb8] sm:$0xff]  }
  0x6c   :  { %240 = vmatmul.mubr.bf16.vlgmr.msra.gmra.mrb[0].mxu0 %v1419_v28 }
  0x6d   :  { %249 = vmatprep.mubr.bf16.mxu0 %v1677_v0  ;;  %732 = vmatpush1.bf16.msra.mxu0 %v1423_v30  ;;  %v1479_v0 = vld [vmem:[#allocation7 + $0x12c] ss:$16 sps:$4 sm:$0xff]  }
  0x6e   :  { %733 = vmatprep.subr.bf16.mxu0 %v1431_v31  ;;  %693 = vmatpush1.bf16.msra.mxu1 %v1468_v41 }
  0x6f   :  { %694 = vmatprep.subr.bf16.mxu1 %v1469_v42 }
  0x71   :  { %734 = vmatpush1.bf16.msra.mxu0 %v1429_v34 }
  0x72   :  { %735 = vmatprep.subr.bf16.mxu0 %v1437_v35  ;;  %695 = vmatpush1.bf16.msra.mxu1 %v1474_v45 }
  0x73   :  { %696 = vmatprep.subr.bf16.mxu1 %v1475_v46 }
  0x74   :  { %250 = vmatmul.mubr.bf16.gmra.mrb[4].mxu0 %v1420_v37 }
  0x75   :  { %736 = vmatpush1.bf16.msra.mxu0 %v1435_v39 }
  0x76   :  { %737 = vmatprep.subr.bf16.mxu0 %v1443_v40  ;;  %697 = vmatpush1.bf16.msra.mxu1 %v1480_v50 }
  0x77   :  { %698 = vmatprep.subr.bf16.mxu1 %v1481_v51 }
  0x79   :  { %738 = vmatpush1.bf16.msra.mxu0 %v1441_v43  ;;  %v1518_v43 = vld [vmem:[#allocation8] sm:$0xff]  }
  0x7a   :  { %739 = vmatprep.subr.bf16.mxu0 %v1449_v44  ;;  %699 = vmatpush1.bf16.msra.mxu1 %v1486_v53  ;;  %v1792_v44 = vld [vmem:[#allocation8 + $0x80] sm:$0xff]  }
  0x7b   :  { %700 = vmatprep.subr.bf16.mxu1 %v1487_v54 }
  0x7d   :  { %740 = vmatpush1.bf16.msra.mxu0 %v1447_v47  ;;  %v1521_v47 = vld [vmem:[#allocation8 + $0x48] sm:$0xff]  }
  0x7e   :  { %741 = vmatprep.subr.bf16.mxu0 %v1455_v48  ;;  %701 = vmatpush1.bf16.msra.mxu1 %v1492_v57  ;;  %v1794_v48 = vld [vmem:[#allocation8 + $0xc8] sm:$0xff]  }
  0x7f   :  { %702 = vmatprep.subr.bf16.mxu1 %v1493_v58  ;;  %v1797_v57 = vld [vmem:[#allocation8 + $0x88] sm:$0xff]  }
  0x81   :  { %742 = vmatpush1.bf16.msra.mxu0 %v1453_v49 }
  0x82   :  { %743 = vmatprep.subr.bf16.mxu0 %v1461_v52  ;;  %703 = vmatpush1.bf16.msra.mxu1 %v1498_v61 }
  0x83   :  { %704 = vmatprep.subr.bf16.mxu1 %v1499_v62 }
  0x85   :  { %744 = vmatpush1.bf16.msra.mxu0 %v1459_v55 }
  0x86   :  { %745 = vmatprep.subr.bf16.mxu0 %v1467_v56  ;;  %705 = vmatpush1.bf16.msra.mxu1 %v1504_v10  ;;  %v1522_v56 = vld [vmem:[#allocation8 + $0x8] sm:$0xff]  }
  0x87   :  { %706 = vmatprep.subr.bf16.mxu1 %v1505_v11  ;;  %v1537_v10 = vld [vmem:[#allocation8 + $0x68] sm:$0xff]  }
  0x88   :  { %v1818_v11 = vld [vmem:[#allocation8 + $0xe8] sm:$0xff]  }
  0x89   :  { %746 = vmatpush1.bf16.msra.mxu0 %v1465_v59  ;;  %v1525_v59 = vld [vmem:[#allocation8 + $0x50] sm:$0xff]  }
  0x8a   :  { %747 = vmatprep.subr.bf16.mxu0 %v1473_v60  ;;  %707 = vmatpush1.bf16.msra.mxu1 %v1510_v14  ;;  %v1800_v60 = vld [vmem:[#allocation8 + $0xd0] sm:$0xff]  }
  0x8b   :  { %708 = vmatprep.subr.bf16.mxu1 %v1511_v15  ;;  %v1541_v14 = vld [vmem:[#allocation8 + $0x70] sm:$0xff]  }
  0x8c   :  { %v1542_v15 = vld [vmem:[#allocation8 + $0x30] sm:$0xff]  }
  0x8d   :  { %748 = vmatpush1.bf16.msra.mxu0 %v1471_v63 }
  0x8e   :  { %749 = vmatprep.subr.bf16.mxu0 %v1479_v0  ;;  %709 = vmatpush1.bf16.msra.mxu1 %v1516_v18  ;;  %v1526_v0 = vld [vmem:[#allocation8 + $0x10] sm:$0xff]   ;;  %v1545_v18 = vld [vmem:[#allocation8 + $0x78] sm:$0xff]  }
  0x8f   :  { %1311 = vmatprep.subr.bf16.mxu1 %v1517_v19  ;;  %v1546_v19 = vld [vmem:[#allocation8 + $0x38] sm:$0xff]  }
  0x91   :  { %750 = vmatpush1.bf16.msra.mxu0 %v1477_v1  ;;  %v1803_v1 = vld [vmem:[#allocation8 + $0x90] sm:$0xff]  }
  0x92   :  { %751 = vmatprep.subr.bf16.mxu0 %v1485_v2  ;;  %v1529_v2 = vld [vmem:[#allocation8 + $0x58] sm:$0xff]  }
  0x95   :  { %752 = vmatpush1.bf16.msra.mxu0 %v1483_v3  ;;  %v1806_v3 = vld [vmem:[#allocation8 + $0xd8] sm:$0xff]  }
  0x96   :  { %753 = vmatprep.subr.bf16.mxu0 %v1491_v4  ;;  %v1530_v4 = vld [vmem:[#allocation8 + $0x18] sm:$0xff]  }
  0x99   :  { %754 = vmatpush1.bf16.msra.mxu0 %v1489_v5  ;;  %v1809_v5 = vld [vmem:[#allocation8 + $0x98] sm:$0xff]  }
  0x9a   :  { %755 = vmatprep.subr.bf16.mxu0 %v1497_v6  ;;  %v1533_v6 = vld [vmem:[#allocation8 + $0x60] sm:$0xff]  }
  0x9d   :  { %756 = vmatpush1.bf16.msra.mxu0 %v1495_v7  ;;  %v1812_v7 = vld [vmem:[#allocation8 + $0xe0] sm:$0xff]  }
  0x9e   :  { %757 = vmatprep.subr.bf16.mxu0 %v1503_v8  ;;  %v1534_v8 = vld [vmem:[#allocation8 + $0x20] sm:$0xff]  }
  0xa1   :  { %758 = vmatpush1.bf16.msra.mxu0 %v1501_v9  ;;  %v1815_v9 = vld [vmem:[#allocation8 + $0xa0] sm:$0xff]  }
  0xa2   :  { %759 = vmatprep.subr.bf16.mxu0 %v1509_v12  ;;  %v1538_v12 = vld [vmem:[#allocation8 + $0x28] sm:$0xff]  }
  0xa5   :  { %760 = vmatpush1.bf16.msra.mxu0 %v1507_v13  ;;  %v1822_v13 = vld [vmem:[#allocation8 + $0xa8] sm:$0xff]  }
  0xa6   :  { %761 = vmatprep.subr.bf16.mxu0 %v1515_v16  ;;  %v1825_v16 = vld [vmem:[#allocation8 + $0xf0] sm:$0xff]  }
  0xa9   :  { %762 = vmatpush1.bf16.msra.mxu0 %v1513_v17  ;;  %v1827_v17 = vld [vmem:[#allocation8 + $0xb0] sm:$0xff]  }
  0xaa   :  { %1339 = vmatprep.subr.bf16.mxu0 %v1778_v20 }
 0x13f   :  { %v241_v28 = vpop.f32.mrb[0].mxu0 }
 0x140   :  { %v242_v29 = vadd.f32 %v241_v28, %v108_v26  ;;  %v243_v30 = vpop.f32.mrb[1].mxu0  ;;  %v352_v28 = vsub.s32 3, %v1781_v22 }
 0x141   :  { %v244_v31 = vadd.f32 %v243_v30, %v112_v27  ;;  %v245_v32 = vpop.f32.mrb[2].mxu0 }
 0x142   :  { %v246_v33 = vadd.f32 %v245_v32, %v108_v26  ;;  %v247_v34 = vpop.f32.mrb[3].mxu0  ;;  %v260_v36 = vmax.f32 %v242_v29, 0.0 }
 0x143   :  { %v248_v35 = vadd.f32 %v247_v34, %v112_v27  ;;  %v261_v38 = vmax.f32 %v244_v31, 0.0 }
 0x144   :  { %v262_v37 = vmax.f32 %v246_v33, 0.0 }
 0x145   :  { %v263_v39 = vmax.f32 %v248_v35, 0.0 }
 0x146   :  { %v268_v40 = vpack.c.bf16 %v262_v37, %v260_v36 }
 0x147   :  { %v269_v41 = vpack.c.bf16 %v263_v39, %v261_v38  ;;  %v251_v42 = vpop.f32.mrb[4].mxu0 }
 0x148   :  { %v252_v45 = vadd.f32 %v251_v42, %v108_v26  ;;  %v253_v46 = vpop.f32.mrb[5].mxu0 }
 0x149   :  { %710 = vmatprep.mubr.bf16.mxu1 %v269_v41  ;;  %763 = vmatprep.mubr.bf16.mxu0 %v269_v41  ;;  %v254_v49 = vadd.f32 %v253_v46, %v112_v27  ;;  %v255_v50 = vpop.f32.mrb[6].mxu0 }
 0x14a   :  { %711 = vmatmul.mubr.bf16.vlgmr.msra.gmra.mrb[0].mxu1 %v268_v40  ;;  %764 = vmatmul.mubr.bf16.vlgmr.msra.gmra.mrb[8].mxu0 %v268_v40  ;;  %v264_v51 = vmax.f32 %v252_v45, 0.0  ;;  %v256_v52 = vadd.f32 %v255_v50, %v108_v26  ;;  %v257_v53 = vpop.f32.mrb[7].mxu0  ;;  %v348_v26 = vsub.s32 2, %v1781_v22 }
 0x14b   :  { %v265_v54 = vmax.f32 %v254_v49, 0.0  ;;  %v258_v55 = vadd.f32 %v257_v53, %v112_v27  ;;  %1312 = vmatpush3.bf16.msra.mxu1 %v1518_v43  ;;  %1340 = vmatpush3.bf16.msra.mxu0 %v1792_v44  ;;  %v336_v27 = vld [vmem:[%s1884_s4] sm:$0xf] }
 0x14c   :  { %v266_v58 = vmax.f32 %v256_v52, 0.0  ;;  %1313 = vmatprep.subr.bf16.mxu1 %v1521_v47  ;;  %1341 = vmatprep.subr.bf16.mxu0 %v1794_v48  ;;  %v341_v29 = vrot.slane %v336_v27, %v107_v23  ;;  %v349_v30 = vrot.slane %v336_v27, %v348_v26  ;;  %v345_v31 = vrot.slane %v336_v27, %v111_v25 }
 0x14d   :  { %v267_v61 = vmax.f32 %v258_v55, 0.0  ;;  %v353_v32 = vrot.slane %v336_v27, %v352_v28 }
 0x14e   :  { %v270_v62 = vpack.c.bf16 %v266_v58, %v264_v51 }
 0x14f   :  { %v271_v63 = vpack.c.bf16 %v267_v61, %v265_v54  ;;  %1314 = vmatpush3.bf16.msra.mxu1 %v1522_v56  ;;  %1342 = vmatpush3.bf16.msra.mxu0 %v1797_v57 }
 0x150   :  { %1315 = vmatprep.subr.bf16.mxu1 %v1525_v59  ;;  %1343 = vmatprep.subr.bf16.mxu0 %v1800_v60 }
 0x151   :  { %720 = vmatprep.mubr.bf16.mxu1 %v271_v63  ;;  %773 = vmatprep.mubr.bf16.mxu0 %v271_v63 }
 0x152   :  { %721 = vmatmul.mubr.bf16.gmra.mrb[4].mxu1 %v270_v62  ;;  %774 = vmatmul.mubr.bf16.gmra.mrb[12].mxu0 %v270_v62 }
 0x153   :  { %1316 = vmatpush3.bf16.msra.mxu1 %v1526_v0  ;;  %1344 = vmatpush3.bf16.msra.mxu0 %v1803_v1 }
 0x154   :  { %1317 = vmatprep.subr.bf16.mxu1 %v1529_v2  ;;  %1345 = vmatprep.subr.bf16.mxu0 %v1806_v3 }
 0x157   :  { %1318 = vmatpush3.bf16.msra.mxu1 %v1530_v4  ;;  %1346 = vmatpush3.bf16.msra.mxu0 %v1809_v5 }
 0x158   :  { %1319 = vmatprep.subr.bf16.mxu1 %v1533_v6  ;;  %1347 = vmatprep.subr.bf16.mxu0 %v1812_v7 }
 0x15b   :  { %1320 = vmatpush3.bf16.msra.mxu1 %v1534_v8  ;;  %1348 = vmatpush3.bf16.msra.mxu0 %v1815_v9 }
 0x15c   :  { %1321 = vmatprep.subr.bf16.mxu1 %v1537_v10  ;;  %1349 = vmatprep.subr.bf16.mxu0 %v1818_v11 }
 0x15f   :  { %1322 = vmatpush3.bf16.msra.mxu1 %v1538_v12  ;;  %1350 = vmatpush3.bf16.msra.mxu0 %v1822_v13 }
 0x160   :  { %1323 = vmatprep.subr.bf16.mxu1 %v1541_v14  ;;  %1351 = vmatprep.subr.bf16.mxu0 %v1825_v16 }
 0x163   :  { %1324 = vmatpush3.bf16.msra.mxu1 %v1542_v15  ;;  %1352 = vmatpush3.bf16.msra.mxu0 %v1827_v17 }
 0x164   :  { %1325 = vmatprep.subr.bf16.mxu1 %v1545_v18  ;;  %1353 = vmatprep.subr.bf16.mxu0 %v1831_v21 }
 0x167   :  { %1326 = vmatpush3.bf16.msra.mxu1 %v1546_v19  ;;  %1354 = vmatpush3.bf16.msra.mxu0 %v1833_v24 }
 0x168   :  { %1367 = vmatprep.subr.bf16.mxu1 %v1778_v20 }
 0x21d   :  { %v712_v33 = vpop.f32.mrb[0].mxu1  ;;  %v765_v34 = vpop.f32.mrb[8].mxu0 }
 0x21e   :  { %v713_v35 = vadd.f32 %v712_v33, %v341_v29  ;;  %v766_v20 = vadd.f32 %v765_v34, %v349_v30  ;;  %v714_v36 = vpop.f32.mrb[1].mxu1  ;;  %v767_v37 = vpop.f32.mrb[9].mxu0 }
 0x21f   :  { %v715_v38 = vadd.f32 %v714_v36, %v345_v31  ;;  %v768_v39 = vadd.f32 %v767_v37, %v353_v32  ;;  %v716_v40 = vpop.f32.mrb[2].mxu1  ;;  %v769_v41 = vpop.f32.mrb[10].mxu0 }
 0x220   :  { %v717_v42 = vadd.f32 %v716_v40, %v341_v29  ;;  %v770_v43 = vadd.f32 %v769_v41, %v349_v30  ;;  %v718_v45 = vpop.f32.mrb[3].mxu1  ;;  %v771_v46 = vpop.f32.mrb[11].mxu0  ;;  %v784_v49 = vmax.f32 %v713_v35, 0.0  ;;  %v786_v22 = vmax.f32 %v766_v20, 0.0 }
 0x221   :  { %v719_v23 = vadd.f32 %v718_v45, %v345_v31  ;;  %v772_v47 = vadd.f32 %v771_v46, %v353_v32  ;;  %v785_v51 = vmax.f32 %v715_v38, 0.0  ;;  %v787_v52 = vmax.f32 %v768_v39, 0.0 }
 0x222   :  { %v788_v25 = vmax.f32 %v717_v42, 0.0  ;;  %v790_v50 = vmax.f32 %v770_v43, 0.0 }
 0x223   :  { %v789_v53 = vmax.f32 %v719_v23, 0.0  ;;  %v791_v54 = vmax.f32 %v772_v47, 0.0 }
 0x224   :  { %v800_v55 = vpack.c.bf16 %v788_v25, %v784_v49  ;;  %v802_v56 = vpack.c.bf16 %v790_v50, %v786_v22 }
 0x225   :  { %v801_v58 = vpack.c.bf16 %v789_v53, %v785_v51  ;;  %v803_v59 = vpack.c.bf16 %v791_v54, %v787_v52  ;;  %v722_v61 = vpop.f32.mrb[4].mxu1  ;;  %v775_v62 = vpop.f32.mrb[12].mxu0 }
 0x226   :  { %v723_v63 = vadd.f32 %v722_v61, %v341_v29  ;;  %v724_v0 = vpop.f32.mrb[5].mxu1  ;;  %v776_v2 = vadd.f32 %v775_v62, %v349_v30  ;;  %v777_v4 = vpop.f32.mrb[13].mxu0 }
 0x227   :  { %1103 = vmatprep.mubr.bf16.mxu1 %v801_v58  ;;  %1152 = vmatprep.mubr.bf16.mxu0 %v803_v59  ;;  %v725_v6 = vadd.f32 %v724_v0, %v345_v31  ;;  %v726_v8 = vpop.f32.mrb[6].mxu1  ;;  %v778_v10 = vadd.f32 %v777_v4, %v353_v32  ;;  %v779_v12 = vpop.f32.mrb[14].mxu0 }
 0x228   :  { %1104 = vmatmul.mubr.bf16.vlgmr.msra.gmra.mrb[8].mxu1 %v800_v55  ;;  %1153 = vmatmul.mubr.bf16.vlgmr.msra.gmra.mrb[16].mxu0 %v802_v56  ;;  %v792_v14 = vmax.f32 %v723_v63, 0.0  ;;  %v727_v15 = vadd.f32 %v726_v8, %v341_v29  ;;  %v728_v18 = vpop.f32.mrb[7].mxu1  ;;  %v794_v19 = vmax.f32 %v776_v2, 0.0  ;;  %v780_v26 = vadd.f32 %v779_v12, %v349_v30  ;;  %v781_v27 = vpop.f32.mrb[15].mxu0 }
 0x229   :  { %1375 = vmatpush3.bf16.msra.mxu1 %v1792_v44  ;;  %v793_v28 = vmax.f32 %v725_v6, 0.0  ;;  %v729_v33 = vadd.f32 %v728_v18, %v345_v31  ;;  %v795_v34 = vmax.f32 %v778_v10, 0.0  ;;  %v782_v35 = vadd.f32 %v781_v27, %v353_v32 }
 0x22a   :  { %v796_v20 = vmax.f32 %v727_v15, 0.0  ;;  %1368 = vmatprep.subr.bf16.mxu1 %v1794_v48  ;;  %v798_v36 = vmax.f32 %v780_v26, 0.0 }
 0x22b   :  { %v797_v37 = vmax.f32 %v729_v33, 0.0  ;;  %v799_v38 = vmax.f32 %v782_v35, 0.0 }
 0x22c   :  { %v804_v39 = vpack.c.bf16 %v796_v20, %v792_v14  ;;  %v806_v40 = vpack.c.bf16 %v798_v36, %v794_v19 }
 0x22d   :  { %v805_v41 = vpack.c.bf16 %v797_v37, %v793_v28  ;;  %1376 = vmatpush3.bf16.msra.mxu1 %v1797_v57  ;;  %v807_v29 = vpack.c.bf16 %v799_v38, %v795_v34  ;;  %v1278_v57 = vld [vmem:[%s1886_s6] ss:$0 sm:$0xff]  ;;  %s1678_s6 = smov [#allocation10]  }
 0x22e   :  { %1369 = vmatprep.subr.bf16.mxu1 %v1800_v60  ;;  %s1182_s10 = sshll.u32 %s1678_s6, 4  ;;  %s1183_s10 = int_to_ptr.vmem [resolvable:$true] %s1182_s10 }
 0x22f   :  { %1111 = vmatprep.mubr.bf16.mxu1 %v805_v41  ;;  %s1637_s13 = scalar_lea.vmem %s1183_s10, 512  ;;  %p1642_p5 = scmp.lt.s32.totalorder %s1183_s10, %s1183_s10 }
 0x230   :  { %1112 = vmatmul.mubr.bf16.gmra.mrb[12].mxu1 %v804_v39  ;;  %p1638_p4 = scmp.ne.s32.totalorder %s1183_s10, %s1637_s13  ;;  %p1643_p6 = scmp.lt.s32.totalorder %s1637_s13, %s1637_s13 }
 0x231   :  { %1377 = vmatpush3.bf16.msra.mxu1 %v1803_v1  ;;  %1160 = vmatprep.mubr.bf16.mxu1 %v807_v29 }
 0x232   :  { %1370 = vmatprep.subr.bf16.mxu1 %v1806_v3  ;;  %p1644_p7 = por %p1643_p6, %p1642_p5 }
 0x234   :  { %p1645_p8 = pnand %p1644_p7, %p1638_p4 }
 0x235   :  { %1378 = vmatpush3.bf16.msra.mxu1 %v1809_v5 }
 0x236   :  { %1371 = vmatprep.subr.bf16.mxu1 %v1812_v7 }
 0x239   :  { %1379 = vmatpush3.bf16.msra.mxu1 %v1815_v9 }
 0x23a   :  { %1372 = vmatprep.subr.bf16.mxu1 %v1818_v11 }
 0x23d   :  { %1380 = vmatpush3.bf16.msra.mxu1 %v1822_v13 }
 0x23e   :  { %1373 = vmatprep.subr.bf16.mxu1 %v1825_v16 }
 0x241   :  { %1381 = vmatpush3.bf16.msra.mxu1 %v1827_v17 }
 0x242   :  { %1374 = vmatprep.subr.bf16.mxu1 %v1831_v21 }
 0x245   :  { %1382 = vmatpush3.bf16.msra.mxu1 %v1833_v24 }
 0x248   :  { %1161 = vmatmul.mubr.bf16.vlgmr.msra.gmra.mrb[16].mxu1 %v806_v40 }
 0x2fb   :  { %v1327_v44 = vpop.f32.mrb[8].mxu1  ;;  %v1355_v48 = vpop.f32.mrb[16].mxu0 }
 0x2fc   :  { %v1328_v60 = vpop.f32.mrb[9].mxu1  ;;  %v1356_v1 = vpop.f32.mrb[17].mxu0 }
 0x2fd   :  { %v1329_v3 = vadd.f32 %v1328_v60, %v1327_v44  ;;  %v1357_v5 = vadd.f32 %v1356_v1, %v1355_v48  ;;  %v1330_v7 = vpop.f32.mrb[10].mxu1  ;;  %v1358_v9 = vpop.f32.mrb[18].mxu0 }
 0x2fe   :  { %v1331_v11 = vpop.f32.mrb[11].mxu1  ;;  %v1359_v13 = vpop.f32.mrb[19].mxu0 }
 0x2ff   :  { %v1106_v16 = vadd.f32 %v1329_v3, %v1278_v57  ;;  %v1332_v17 = vadd.f32 %v1331_v11, %v1330_v7  ;;  %v1360_v21 = vadd.f32 %v1359_v13, %v1358_v9 }
 0x301   :  { %v1155_v30 = vadd.f32 %v1357_v5, %v1106_v16  ;;  %v1109_v24 = vadd.f32 %v1332_v17, %v1278_v57 }
 0x303   :  { %v1169_v31 = vmax.f32 %v1155_v30, 0.0  ;;  %v1158_v32 = vadd.f32 %v1360_v21, %v1109_v24  ;;  %v1333_v42 = vpop.f32.mrb[12].mxu1 }
 0x304   :  { %v1334_v43 = vpop.f32.mrb[13].mxu1 }
 0x305   :  { %1173 = vst [vmem:[#allocation10] sm:$0xff] %v1169_v31  ;;  %v1170_v45 = vmax.f32 %v1158_v32, 0.0  ;;  %v1335_v46 = vadd.f32 %v1334_v43, %v1333_v42  ;;  %v1336_v23 = vpop.f32.mrb[14].mxu1 }
 0x306   :  { %v1337_v47 = vpop.f32.mrb[15].mxu1 }
 0x307   :  { %1174 = vst [vmem:[#allocation10 + $0x8] sm:$0xff] %v1170_v45  ;;  %v1338_v49 = vadd.f32 %v1337_v47, %v1336_v23  ;;  %v1114_v50 = vadd.f32 %v1335_v46, %v1278_v57 }
 0x309   :  { %v1117_v54 = vadd.f32 %v1338_v49, %v1278_v57 }
 0x31b   :  { %v1361_v22 = vpop.f32.mrb[16].mxu1 }
 0x31c   :  { %v1362_v25 = vpop.f32.mrb[17].mxu1 }
 0x31d   :  { %v1363_v51 = vadd.f32 %v1362_v25, %v1361_v22  ;;  %v1364_v52 = vpop.f32.mrb[18].mxu1 }
 0x31e   :  { %v1365_v53 = vpop.f32.mrb[19].mxu1 }
 0x31f   :  { %v1163_v55 = vadd.f32 %v1363_v51, %v1114_v50  ;;  %v1366_v56 = vadd.f32 %v1365_v53, %v1364_v52 }
 0x321   :  { %v1171_v58 = vmax.f32 %v1163_v55, 0.0  ;;  %v1166_v59 = vadd.f32 %v1366_v56, %v1117_v54 }
 0x323   :  { %1175 = vst [vmem:[#allocation10 + $0x10] sm:$0xff] %v1171_v58  ;;  %v1172_v61 = vmax.f32 %v1166_v59, 0.0 }
 0x325   :  { %1176 = vst [vmem:[#allocation10 + $0x18] sm:$0xff] %v1172_v61 }
 0x326   :  { %1648 = shalt.err (!%p1645_p8)
}
 0x327   :  { %s1649_s17 = scalar_lea.hbm %s1887_s7, 512 }
 0x328   :  { %p1650_p9 = scmp.ne.s32.totalorder %s1887_s7, %s1649_s17  ;;  %p1653_p10 = scmp.lt.u32.totalorder %s1649_s17, %s1887_s7 }
 0x32a   :  { %p1655_p11 = pnand %p1653_p10, %p1650_p9 }
 0x32c   :  { %1658 = shalt.err (!%p1655_p11)
}
 0x32d   :  { %1188 = dma.vmem_to_hbm [thread:$0]  %s1183_s10, 512, %s1887_s7, [#allocation4], %s1668_s11, %s1668_s11, %s1669_s12  }
 0x32e   :  { %1665 = dma.done.wait [#allocation4], 512  }
 0x32f   :  { %1666 = vsyncadd [#allocation4], 4294966784 }
 0x330   :  { %1192 = vsyncpa [#allocation3], 1 }
 0x331   :  { %1193 = vsyncpa [#allocation6], 1 }
 0x332   :  { %1194 = vsyncpa [#allocation9], 1 }
 0x333   :  { %1195 = vsyncpa [#allocation4], 1 }

</bundles_post_ra>
